<compile_context>
chip_gen: v7x
topology: tpu7x:2x2x1
jax: 0.10.0
libtpu: 0.0.40
codegen_flags: <defaults>
</compile_context>

<pallas_src>
import jax
import jax.numpy as jnp
from jax.experimental import pallas as pl
from jax.experimental.pallas import tpu as pltpu

_LN_EPS = 1e-5  # torch nn.LayerNorm default


def _round_up(x, m):
    return ((x + m - 1) // m) * m


def resampler_kernel(x_ref, gamma_ref, beta_ref, w_ref, o_ref):
    """Fused LayerNorm(E) -> Linear(E->th, no bias) -> ReLU on one row tile."""
    x = x_ref[...].astype(jnp.float32)                       # (TN, E)
    mean = jnp.mean(x, axis=-1, keepdims=True)
    xc = x - mean
    var = jnp.mean(xc * xc, axis=-1, keepdims=True)
    xn = xc * jax.lax.rsqrt(var + _LN_EPS)                    # EUP rsqrt
    xn = xn * gamma_ref[...] + beta_ref[...]                  # affine LN (f32)

    # bf16 MXU matmul, f32 accumulation.
    h = jnp.dot(xn.astype(jnp.bfloat16), w_ref[...],
                preferred_element_type=jnp.float32)           # (TN, th)
    o_ref[...] = jnp.maximum(h, 0.0).astype(o_ref.dtype)      # ReLU
    # TODO(synk): nn.Dropout(0.25) is identity at inference; omitted.


def resampler_forward(x, gamma, beta, w, *, block_n=256, block_h=1024):
    """x: (..., E) ; gamma/beta: (E,) ; w: (E, H). Returns (..., H) bf16."""
    *lead, E = x.shape
    H = w.shape[1]
    N = 1
    for d in lead:
        N *= d

    x2 = x.reshape(N, E).astype(jnp.bfloat16)
    gamma2 = gamma.reshape(1, E).astype(jnp.float32)
    beta2 = beta.reshape(1, E).astype(jnp.float32)
    w_bf = w.astype(jnp.bfloat16)

    # Tile over the token axis; pad so every tile is full (rows sliced off).
    tn = min(block_n, _round_up(N, 8))
    n_pad = _round_up(N, tn)
    if n_pad != N:
        x2 = jnp.pad(x2, ((0, n_pad - N), (0, 0)))

    # Tile over the hidden axis (lane axis of the output).
    th = H if H <= block_h else block_h
    assert H % th == 0 and (th % 128 == 0 or th == H), "bad hidden tiling"

    grid = (n_pad // tn, H // th)

    cost = pl.CostEstimate(
        flops=2 * n_pad * E * H + 10 * n_pad * E * (H // th),
        transcendentals=n_pad * (H // th),
        bytes_accessed=(n_pad * E * 2 * (H // th) + E * H * 2
                        + n_pad * H * 2 + 2 * E * 4),
    )

    out = pl.pallas_call(
        resampler_kernel,
        out_shape=jax.ShapeDtypeStruct((n_pad, H), jnp.bfloat16),
        grid_spec=pltpu.PrefetchScalarGridSpec(
            num_scalar_prefetch=0,
            grid=grid,
            in_specs=[
                pl.BlockSpec((tn, E), lambda i, j: (i, 0)),   # x tile (streamed)
                pl.BlockSpec((1, E), lambda i, j: (0, 0)),    # LN gamma (resident)
                pl.BlockSpec((1, E), lambda i, j: (0, 0)),    # LN beta  (resident)
                pl.BlockSpec((E, th), lambda i, j: (0, j)),   # W column block
            ],
            out_specs=pl.BlockSpec((tn, th), lambda i, j: (i, j)),
        ),
        compiler_params=pltpu.CompilerParams(
            dimension_semantics=("parallel", "parallel"),
            vmem_limit_bytes=64 * 1024 * 1024,
        ),
        cost_estimate=cost,
    )(x2, gamma2, beta2, w_bf)

    return out[:N].reshape(*lead, H)


# ----------------------- host-side PPathVLM plumbing -----------------------

def split_and_pad(image_embeds, p_num):
    """JAX port of PPathVLM._split_and_pad (pure data movement)."""
    max_len = max(p_num)
    padded, masks = [], []
    start = 0
    for n in p_num:
        seg = image_embeds[start:start + n]
        start += n
        pad = max_len - n
        padded.append(jnp.pad(seg, ((0, pad), (0, 0))))
        masks.append(jnp.concatenate(
            [jnp.ones((n,), jnp.int32), jnp.zeros((pad,), jnp.int32)]))
    return jnp.stack(padded), jnp.stack(masks)


def pad_attention_fusion(new_seq_len, need_pad_seq):
    bz, cur = need_pad_seq.shape
    pad = jnp.ones((bz, new_seq_len - cur), need_pad_seq.dtype)
    return jnp.concatenate([pad, need_pad_seq], axis=1)


if __name__ == "__main__":
    # Small shapes consistent with the module (real: embed_dim 512/1024,
    # hidden_size ~4096, hundreds of patches per WSI bag).
    E, H = 256, 512            # embed_dim, llm hidden_size
    vocab = 128
    p_num = [20, 17]           # patches per bag -> max_len 20, uneven => padding
    T = 8                      # text token length
    image_token_id = 3

    key = jax.random.PRNGKey(0)
    k1, k2, k3, k4, k5, k6 = jax.random.split(key, 6)
    image_embeds = jax.random.normal(k1, (sum(p_num), E), dtype=jnp.float32)
    gamma = 1.0 + 0.1 * jax.random.normal(k2, (E,), dtype=jnp.float32)
    beta = 0.1 * jax.random.normal(k3, (E,), dtype=jnp.float32)
    w = jax.random.normal(k4, (E, H), dtype=jnp.float32) * 0.05
    embed_table = jax.random.normal(k5, (vocab, H), dtype=jnp.float32) * 0.02
    input_ids = jax.random.randint(k6, (len(p_num), T), 0, vocab)
    attention_mask = jnp.ones((len(p_num), T), dtype=jnp.int32)

    # TODO(synk): vision_encoder (pretrained CLIP/ViT) is out of kernel scope;
    # image_embeds stand in for its output.
    padded, image_atts = split_and_pad(image_embeds, p_num)
    padded_bf = padded.astype(jnp.bfloat16)        # forward casts to bf16

    # ---- Pallas kernel: resampler_layer ----
    mapped = resampler_forward(padded_bf, gamma, beta, w,
                               block_n=128, block_h=512)
    mapped = jax.block_until_ready(mapped)

    # ---- fusion embedding / mask padding (plain jnp, as in the module) ----
    token_embs = jnp.take(embed_table, input_ids, axis=0)
    img_tok = jnp.broadcast_to(embed_table[image_token_id],
                               (len(p_num), 1, H))
    fusion_embs = jnp.concatenate(
        [img_tok, mapped.astype(jnp.float32), token_embs], axis=1)
    attn = jnp.concatenate([image_atts, attention_mask], axis=1)
    attn = pad_attention_fusion(fusion_embs.shape[1], attn)
    # TODO(synk): the pretrained causal LLM forward (+ loss over labels) is a
    # whole network and is not reimplemented here.

    # ---- pure-JAX reference for the kernel (same bf16 quantization) ----
    xf = padded_bf.astype(jnp.float32)
    mean = xf.mean(-1, keepdims=True)
    xc = xf - mean
    var = (xc * xc).mean(-1, keepdims=True)
    xn = xc / jnp.sqrt(var + _LN_EPS) * gamma + beta
    ref = jnp.maximum(
        xn.astype(jnp.bfloat16).astype(jnp.float32)
        @ w.astype(jnp.bfloat16).astype(jnp.float32), 0.0)

    assert mapped.shape == (len(p_num), max(p_num), H)
    assert fusion_embs.shape == (len(p_num), 1 + max(p_num) + T, H)
    assert attn.shape == (len(p_num), fusion_embs.shape[1])
    assert jnp.allclose(mapped.astype(jnp.float32), ref,
                        atol=5e-2, rtol=5e-2), "mismatch vs reference"

    print("KERNEL_OK")
</pallas_src>

<mosaic_0001>
module attributes {stable_mosaic.version = 11 : i64} {
  func.func @resampler_kernel(%arg0: i32, %arg1: i32, %arg2: memref<40x256xbf16, #tpu.memory_space<vmem>>, %arg3: memref<1x256xf32, #tpu.memory_space<vmem>>, %arg4: memref<1x256xf32, #tpu.memory_space<vmem>>, %arg5: memref<256x512xbf16, #tpu.memory_space<vmem>>, %arg6: memref<40x512xbf16, #tpu.memory_space<vmem>>) attributes {dimension_semantics = [#tpu.dimension_semantics<parallel>, #tpu.dimension_semantics<parallel>], iteration_bounds = array<i64: 1, 1>, scalar_prefetch = 0 : i64, scratch_operands = 0 : i64, tpu.core_type = #tpu.core_type<tc>, window_params = [{transform_indices = @transform_0, window_bounds = array<i64: 40, 256>}, {pipeline_mode = #tpu.pipeline_mode<synchronous>, transform_indices = @transform_1, window_bounds = array<i64: 1, 256>}, {pipeline_mode = #tpu.pipeline_mode<synchronous>, transform_indices = @transform_2, window_bounds = array<i64: 1, 256>}, {transform_indices = @transform_3, window_bounds = array<i64: 256, 512>}, {transform_indices = @transform_4, window_bounds = array<i64: 40, 512>}]} {
    %c0 = arith.constant 0 : index
    %c0_0 = arith.constant 0 : index
    %0 = vector.load %arg2[%c0, %c0_0] : memref<40x256xbf16, #tpu.memory_space<vmem>>, vector<40x256xbf16>
    %1 = arith.extf %0 : vector<40x256xbf16> to vector<40x256xf32>
    %cst = arith.constant dense<0.000000e+00> : vector<40xf32>
    %2 = vector.multi_reduction <add>, %1, %cst [1] : vector<40x256xf32> to vector<40xf32>
    %3 = vector.shape_cast %2 : vector<40xf32> to vector<40x1xf32>
    %cst_1 = arith.constant 2.560000e+02 : f32
    %4 = vector.broadcast %cst_1 : f32 to vector<40x1xf32>
    %5 = arith.divf %3, %4 : vector<40x1xf32>
    %6 = vector.broadcast %5 : vector<40x1xf32> to vector<40x256xf32>
    %7 = arith.subf %1, %6 : vector<40x256xf32>
    %8 = arith.mulf %7, %7 : vector<40x256xf32>
    %cst_2 = arith.constant dense<0.000000e+00> : vector<40xf32>
    %9 = vector.multi_reduction <add>, %8, %cst_2 [1] : vector<40x256xf32> to vector<40xf32>
    %10 = vector.shape_cast %9 : vector<40xf32> to vector<40x1xf32>
    %cst_3 = arith.constant 2.560000e+02 : f32
    %11 = vector.broadcast %cst_3 : f32 to vector<40x1xf32>
    %12 = arith.divf %10, %11 : vector<40x1xf32>
    %cst_4 = arith.constant 9.99999974E-6 : f32
    %13 = vector.broadcast %cst_4 : f32 to vector<40x1xf32>
    %14 = arith.addf %12, %13 : vector<40x1xf32>
    %15 = math.rsqrt %14 : vector<40x1xf32>
    %16 = vector.broadcast %15 : vector<40x1xf32> to vector<40x256xf32>
    %17 = arith.mulf %7, %16 : vector<40x256xf32>
    %c0_5 = arith.constant 0 : index
    %c0_6 = arith.constant 0 : index
    %18 = vector.load %arg3[%c0_5, %c0_6] : memref<1x256xf32, #tpu.memory_space<vmem>>, vector<1x256xf32>
    %19 = vector.broadcast %18 : vector<1x256xf32> to vector<40x256xf32>
    %20 = arith.mulf %17, %19 : vector<40x256xf32>
    %c0_7 = arith.constant 0 : index
    %c0_8 = arith.constant 0 : index
    %21 = vector.load %arg4[%c0_7, %c0_8] : memref<1x256xf32, #tpu.memory_space<vmem>>, vector<1x256xf32>
    %22 = vector.broadcast %21 : vector<1x256xf32> to vector<40x256xf32>
    %23 = arith.addf %20, %22 : vector<40x256xf32>
    %24 = arith.truncf %23 : vector<40x256xf32> to vector<40x256xbf16>
    %c0_9 = arith.constant 0 : index
    %c0_10 = arith.constant 0 : index
    %25 = vector.load %arg5[%c0_9, %c0_10] : memref<256x512xbf16, #tpu.memory_space<vmem>>, vector<256x512xbf16>
    %cst_11 = arith.constant dense<0.000000e+00> : vector<40x512xf32>
    %26 = tpu.matmul %24, %25, %cst_11 {dimension_numbers = #tpu.dot_dimension_numbers<[1], [0], [0], [1], [0, 0, 1, 1], [], []>} : vector<40x256xbf16>, vector<256x512xbf16>, vector<40x512xf32> -> vector<40x512xf32>
    %cst_12 = arith.constant 0.000000e+00 : f32
    %27 = vector.broadcast %cst_12 : f32 to vector<40x512xf32>
    %28 = arith.maximumf %26, %27 : vector<40x512xf32>
    %29 = arith.truncf %28 : vector<40x512xf32> to vector<40x512xbf16>
    %c0_13 = arith.constant 0 : index
    %c0_14 = arith.constant 0 : index
    %30 = vector.load %arg6[%c0_13, %c0_14] : memref<40x512xbf16, #tpu.memory_space<vmem>>, vector<40x512xbf16>
    tpu.vector_store %arg6[%c0_13, %c0_14], %29 {strides = array<i32>} : memref<40x512xbf16, #tpu.memory_space<vmem>>, vector<40x512xbf16>,
    return
  }
  func.func @transform_0(%arg0: i32, %arg1: i32) -> (i32, i32) {
    %c0_i32 = arith.constant 0 : i32
    %c0_i32_0 = arith.constant 0 : i32
    return %arg0, %c0_i32 : i32, i32
  }
  func.func @transform_1(%arg0: i32, %arg1: i32) -> (i32, i32) {
    %c0_i32 = arith.constant 0 : i32
    %c0_i32_0 = arith.constant 0 : i32
    %c0_i32_1 = arith.constant 0 : i32
    return %c0_i32, %c0_i32_0 : i32, i32
  }
  func.func @transform_2(%arg0: i32, %arg1: i32) -> (i32, i32) {
    %c0_i32 = arith.constant 0 : i32
    %c0_i32_0 = arith.constant 0 : i32
    %c0_i32_1 = arith.constant 0 : i32
    return %c0_i32, %c0_i32_0 : i32, i32
  }
  func.func @transform_3(%arg0: i32, %arg1: i32) -> (i32, i32) {
    %c0_i32 = arith.constant 0 : i32
    %c0_i32_0 = arith.constant 0 : i32
    return %c0_i32, %arg1 : i32, i32
  }
  func.func @transform_4(%arg0: i32, %arg1: i32) -> (i32, i32) {
    %c0_i32 = arith.constant 0 : i32
    return %arg0, %arg1 : i32, i32
  }
}

</mosaic_0001>

<bundles_post_ra>
// kernel: tpu_custom_call.1
= control target key start
LH: loop header
LB: loop body
LE: loop exit
PB: predicated region body
PF: predicated region fallthrough
CT: control target
= control target key end

     0   :  { %9 = vsyncpa [#allocation3], 0  ;;  %s1375_s0 = inlined_call_operand.hbm [shape: bf16[40,256], index: 0, kind: input, shape index: {}]   ;;  %s1376_s1 = inlined_call_operand.hbm [shape: f32[1,256], index: 1, kind: input, shape index: {}]   ;;  %s1377_s2 = inlined_call_operand.hbm [shape: f32[1,256], index: 2, kind: input, shape index: {}]   ;;  %s1378_s3 = inlined_call_operand.hbm [shape: bf16[256,512], index: 3, kind: input, shape index: {}]   ;;  %s1379_s4 = inlined_call_operand.hbm [shape: bf16[40,512], index: 4, kind: output, shape index: {}]  }
   0x1   :  { %10 = vsyncpa [#allocation6], 0 }
   0x2   :  { %11 = vsyncpa [#allocation9], 0 }
   0x3   :  { %12 = vsyncpa [#allocation4], 0  ;;  %s1151_s15 = smov [#allocation5]   ;;  %s1152_s17 = smov [#allocation2]  }
   0x4   :  { %s31_s16 = sshll.u32 %s1151_s15, 4  ;;  %s18_s18 = sshll.u32 %s1152_s17, 4  ;;  %s32_s16 = int_to_ptr.vmem [resolvable:$true] %s31_s16  ;;  %s1185_s18 = int_to_ptr.vmem [resolvable:$true] %s18_s18 }
   0x5   :  { %s1033_s21 = scalar_lea.hbm %s1376_s1, 32 }
   0x6   :  { %p1034_p0 = scmp.ne.s32.totalorder %s1376_s1, %s1033_s21  ;;  %p1037_p1 = scmp.lt.u32.totalorder %s1033_s21, %s1376_s1 }
   0x8   :  { %p1039_p2 = pnand %p1037_p1, %p1034_p0 }
   0xa   :  { %1042 = shalt.err (!%p1039_p2)
}
   0xb   :  { %s1043_s26 = scalar_lea.vmem %s32_s16, 32  ;;  %p1048_p4 = scmp.lt.s32.totalorder %s32_s16, %s32_s16 }
   0xc   :  { %p1044_p3 = scmp.ne.s32.totalorder %s32_s16, %s1043_s26  ;;  %p1049_p5 = scmp.lt.s32.totalorder %s1043_s26, %s1043_s26 }
   0xe   :  { %p1050_p6 = por %p1049_p5, %p1048_p4 }
  0x10   :  { %p1051_p7 = pnand %p1050_p6, %p1044_p3 }
  0x12   :  { %1054 = shalt.err (!%p1051_p7)
}
  0x13   :  { %34 = dma.hbm_to_vmem [thread:$0]  %s1376_s1, 32, %s32_s16, [#allocation6]  }
  0x14   :  { %s1055_s5 = scalar_lea.hbm %s1375_s0, 640 }
  0x15   :  { %p1056_p8 = scmp.ne.s32.totalorder %s1375_s0, %s1055_s5  ;;  %p1059_p9 = scmp.lt.u32.totalorder %s1055_s5, %s1375_s0 }
  0x17   :  { %p1061_p10 = pnand %p1059_p9, %p1056_p8 }
  0x19   :  { %1064 = shalt.err (!%p1061_p10)
}
  0x1a   :  { %s1065_s10 = scalar_lea.vmem %s1185_s18, 640  ;;  %p1070_p12 = scmp.lt.s32.totalorder %s1185_s18, %s1185_s18 }
  0x1b   :  { %p1066_p11 = scmp.ne.s32.totalorder %s1185_s18, %s1065_s10  ;;  %p1071_p13 = scmp.lt.s32.totalorder %s1065_s10, %s1065_s10 }
  0x1d   :  { %p1072_p0 = por %p1071_p13, %p1070_p12 }
  0x1f   :  { %p1073_p1 = pnand %p1072_p0, %p1066_p11 }
  0x21   :  { %1076 = shalt.err (!%p1073_p1)
}
  0x22   :  { %s1153_s1 = smov 128   ;;  %s1154_s11 = smov 8  }
  0x23   :  { %24 = dma.hbm_to_vmem [thread:$0]  %s1375_s0, 640, %s1185_s18, [#allocation3], %s1153_s1, %s1153_s1, %s1154_s11  }
  0x24   :  { %s1155_s14 = smov [#allocation7]   ;;  %s1156_s16 = smov [#allocation8]  }
  0x25   :  { %s41_s15 = sshll.u32 %s1155_s14, 4  ;;  %s50_s17 = sshll.u32 %s1156_s16, 4  ;;  %s42_s15 = int_to_ptr.vmem [resolvable:$true] %s41_s15  ;;  %s1216_s17 = int_to_ptr.vmem [resolvable:$true] %s50_s17 }
  0x26   :  { %s1077_s21 = scalar_lea.hbm %s1377_s2, 32 }
  0x27   :  { %p1078_p2 = scmp.ne.s32.totalorder %s1377_s2, %s1077_s21  ;;  %p1081_p3 = scmp.lt.u32.totalorder %s1077_s21, %s1377_s2 }
  0x29   :  { %p1083_p4 = pnand %p1081_p3, %p1078_p2 }
  0x2b   :  { %1086 = shalt.err (!%p1083_p4)
}
  0x2c   :  { %s1087_s0 = scalar_lea.vmem %s42_s15, 32  ;;  %p1092_p6 = scmp.lt.s32.totalorder %s42_s15, %s42_s15 }
  0x2d   :  { %p1088_p5 = scmp.ne.s32.totalorder %s42_s15, %s1087_s0  ;;  %p1093_p7 = scmp.lt.s32.totalorder %s1087_s0, %s1087_s0 }
  0x2f   :  { %p1094_p8 = por %p1093_p7, %p1092_p6 }
  0x31   :  { %p1095_p9 = pnand %p1094_p8, %p1088_p5 }
  0x33   :  { %1098 = shalt.err (!%p1095_p9)
}
  0x34   :  { %44 = dma.hbm_to_vmem [thread:$0]  %s1377_s2, 32, %s42_s15, [#allocation6]  }
  0x35   :  { %s1099_s29 = scalar_lea.hbm %s1378_s3, 8192 }
  0x36   :  { %p1100_p10 = scmp.ne.s32.totalorder %s1378_s3, %s1099_s29  ;;  %p1103_p11 = scmp.lt.u32.totalorder %s1099_s29, %s1378_s3 }
  0x38   :  { %p1105_p12 = pnand %p1103_p11, %p1100_p10 }
  0x3a   :  { %1108 = shalt.err (!%p1105_p12)
}
  0x3b   :  { %s1109_s8 = scalar_lea.vmem %s1216_s17, 8192  ;;  %p1114_p0 = scmp.lt.s32.totalorder %s1216_s17, %s1216_s17 }
  0x3c   :  { %p1110_p13 = scmp.ne.s32.totalorder %s1216_s17, %s1109_s8  ;;  %p1115_p1 = scmp.lt.s32.totalorder %s1109_s8, %s1109_s8 }
  0x3e   :  { %p1116_p2 = por %p1115_p1, %p1114_p0 }
  0x40   :  { %p1117_p3 = pnand %p1116_p2, %p1110_p13 }
  0x42   :  { %1120 = shalt.err (!%p1117_p3)
}
  0x43   :  { %s1157_s2 = smov 256   ;;  %s1158_s9 = smov 16  }
  0x44   :  { %56 = dma.hbm_to_vmem [thread:$0]  %s1378_s3, 8192, %s1216_s17, [#allocation9], %s1157_s2, %s1157_s2, %s1158_s9  }
  0x45   :  { %1143 = dma.done.wait [#allocation3], 640  }
  0x46   :  { %1144 = vsyncadd [#allocation3], 4294966656 }
  0x47   :  { %1145 = dma.done.wait [#allocation6], 64  }
  0x48   :  { %1146 = vsyncadd [#allocation6], 4294967232 }
  0x49   :  { %1147 = dma.done.wait [#allocation9], 8192  }
  0x4a   :  { %1148 = vsyncadd [#allocation9], 4294959104  ;;  %v1250_v0 = vld [vmem:[#allocation2] sm:$0xff]  ;;  %v1252_v1 = vld [vmem:[#allocation2 + $0x10] sm:$0xff]  ;;  %s1159_s3 = smov [#allocation10]  }
  0x4b   :  { %v1254_v2 = vld [vmem:[#allocation2 + $0x8] sm:$0xff]  ;;  %v74_v3 = vunpack.c.l.bf16 %v1250_v0  ;;  %v75_v4 = vunpack.c.h.bf16 %v1250_v0  ;;  %v78_v5 = vunpack.c.l.bf16 %v1252_v1  ;;  %v79_v6 = vunpack.c.h.bf16 %v1252_v1  ;;  %v1260_v7 = vld [vmem:[#allocation2 + $0x18] sm:$0xff]  ;;  %v1262_v8 = vld [vmem:[#allocation2 + $0x20] sm:$0xff]  ;;  %s820_s11 = sshll.u32 %s1159_s3, 4  ;;  %s821_s11 = int_to_ptr.vmem [resolvable:$true] %s820_s11 }
  0x4c   :  { %v76_v9 = vunpack.c.l.bf16 %v1254_v2  ;;  %v77_v10 = vunpack.c.h.bf16 %v1254_v2  ;;  %v80_v11 = vunpack.c.l.bf16 %v1260_v7  ;;  %v81_v12 = vunpack.c.h.bf16 %v1260_v7  ;;  %v927_v20 = vld [vmem:[#allocation8 + $0x4] ss:$16 sps:$4 sm:$0xff]   ;;  %v929_v21 = vld [vmem:[#allocation8 + $0xc] ss:$16 sps:$4 sm:$0xff]   ;;  %v931_v22 = vld [vmem:[#allocation8] ss:$16 sps:$4 sm:$0xff]   ;;  %p1126_p5 = scmp.lt.s32.totalorder %s821_s11, %s821_s11 }
  0x4d   :  { %v84_v13 = vadd.f32 %v75_v4, %v74_v3  ;;  %v90_v14 = vadd.f32 %v79_v6, %v78_v5  ;;  %v82_v17 = vunpack.c.l.bf16 %v1262_v8  ;;  %v83_v18 = vunpack.c.h.bf16 %v1262_v8  ;;  %v932_v23 = vld [vmem:[#allocation8 + $0x8] ss:$16 sps:$4 sm:$0xff]   ;;  %v933_v24 = vld [vmem:[#allocation8 + $0x24] ss:$16 sps:$4 sm:$0xff]   ;;  %v935_v25 = vld [vmem:[#allocation8 + $0x2c] ss:$16 sps:$4 sm:$0xff]   ;;  %599 = vmatprep.subr.bf16.mxu0 %v927_v20  ;;  %660 = vmatprep.subr.bf16.mxu1 %v929_v21 }
  0x4e   :  { %v87_v15 = vadd.f32 %v77_v10, %v76_v9  ;;  %v93_v16 = vadd.f32 %v81_v12, %v80_v11  ;;  %600 = vmatpush1.bf16.msra.mxu0 %v931_v22  ;;  %661 = vmatpush1.bf16.msra.mxu1 %v932_v23  ;;  %v937_v26 = vld [vmem:[#allocation8 + $0x20] ss:$16 sps:$4 sm:$0xff]   ;;  %v938_v27 = vld [vmem:[#allocation8 + $0x28] ss:$16 sps:$4 sm:$0xff]   ;;  %v939_v28 = vld [vmem:[#allocation8 + $0x44] ss:$16 sps:$4 sm:$0xff]  }
  0x4f   :  { %85 = vadd.xlane.f32.xlu0 %v84_v13  ;;  %91 = vadd.xlane.f32.xlu1 %v90_v14  ;;  %v96_v19 = vadd.f32 %v83_v18, %v82_v17  ;;  %v941_v29 = vld [vmem:[#allocation8 + $0x4c] ss:$16 sps:$4 sm:$0xff]   ;;  %v943_v30 = vld [vmem:[#allocation8 + $0x40] ss:$16 sps:$4 sm:$0xff]   ;;  %v944_v31 = vld [vmem:[#allocation8 + $0x48] ss:$16 sps:$4 sm:$0xff]  }
  0x50   :  { %601 = vmatprep.subr.bf16.mxu0 %v933_v24  ;;  %662 = vmatprep.subr.bf16.mxu1 %v935_v25  ;;  %v945_v32 = vld [vmem:[#allocation8 + $0x64] ss:$16 sps:$4 sm:$0xff]   ;;  %v947_v33 = vld [vmem:[#allocation8 + $0x6c] ss:$16 sps:$4 sm:$0xff]   ;;  %v949_v34 = vld [vmem:[#allocation8 + $0x60] ss:$16 sps:$4 sm:$0xff]  }
  0x51   :  { %v950_v35 = vld [vmem:[#allocation8 + $0x68] ss:$16 sps:$4 sm:$0xff]   ;;  %v951_v36 = vld [vmem:[#allocation8 + $0x84] ss:$16 sps:$4 sm:$0xff]   ;;  %v953_v37 = vld [vmem:[#allocation8 + $0x8c] ss:$16 sps:$4 sm:$0xff]  }
  0x52   :  { %602 = vmatpush1.bf16.msra.mxu0 %v937_v26  ;;  %663 = vmatpush1.bf16.msra.mxu1 %v938_v27  ;;  %v955_v38 = vld [vmem:[#allocation8 + $0x80] ss:$16 sps:$4 sm:$0xff]   ;;  %v956_v39 = vld [vmem:[#allocation8 + $0x88] ss:$16 sps:$4 sm:$0xff]   ;;  %v957_v40 = vld [vmem:[#allocation8 + $0xa4] ss:$16 sps:$4 sm:$0xff]  }
  0x53   :  { %88 = vadd.xlane.f32.xlu0 %v87_v15  ;;  %94 = vadd.xlane.f32.xlu1 %v93_v16  ;;  %v959_v41 = vld [vmem:[#allocation8 + $0xac] ss:$16 sps:$4 sm:$0xff]   ;;  %v961_v42 = vld [vmem:[#allocation8 + $0xa0] ss:$16 sps:$4 sm:$0xff]   ;;  %v962_v43 = vld [vmem:[#allocation8 + $0xa8] ss:$16 sps:$4 sm:$0xff]  }
  0x54   :  { %603 = vmatprep.subr.bf16.mxu0 %v939_v28  ;;  %664 = vmatprep.subr.bf16.mxu1 %v941_v29  ;;  %v963_v44 = vld [vmem:[#allocation8 + $0xc4] ss:$16 sps:$4 sm:$0xff]   ;;  %v965_v45 = vld [vmem:[#allocation8 + $0xcc] ss:$16 sps:$4 sm:$0xff]   ;;  %v967_v46 = vld [vmem:[#allocation8 + $0xc0] ss:$16 sps:$4 sm:$0xff]  }
  0x55   :  { %v968_v47 = vld [vmem:[#allocation8 + $0xc8] ss:$16 sps:$4 sm:$0xff]   ;;  %v969_v48 = vld [vmem:[#allocation8 + $0xe4] ss:$16 sps:$4 sm:$0xff]   ;;  %v971_v49 = vld [vmem:[#allocation8 + $0xec] ss:$16 sps:$4 sm:$0xff]  }
  0x56   :  { %604 = vmatpush1.bf16.msra.mxu0 %v943_v30  ;;  %665 = vmatpush1.bf16.msra.mxu1 %v944_v31  ;;  %v973_v50 = vld [vmem:[#allocation8 + $0xe0] ss:$16 sps:$4 sm:$0xff]   ;;  %v974_v51 = vld [vmem:[#allocation8 + $0xe8] ss:$16 sps:$4 sm:$0xff]   ;;  %v975_v52 = vld [vmem:[#allocation8 + $0x104] ss:$16 sps:$4 sm:$0xff]  }
  0x57   :  { %97 = vadd.xlane.f32.xlu0 %v96_v19  ;;  %605 = vmatprep.subr.bf16.mxu0 %v945_v32  ;;  %v977_v53 = vld [vmem:[#allocation8 + $0x10c] ss:$16 sps:$4 sm:$0xff]   ;;  %v979_v54 = vld [vmem:[#allocation8 + $0x100] ss:$16 sps:$4 sm:$0xff]   ;;  %v980_v55 = vld [vmem:[#allocation8 + $0x108] ss:$16 sps:$4 sm:$0xff]  }
  0x58   :  { %666 = vmatprep.subr.bf16.mxu1 %v947_v33  ;;  %v981_v30 = vld [vmem:[#allocation8 + $0x124] ss:$16 sps:$4 sm:$0xff]   ;;  %v985_v31 = vld [vmem:[#allocation8 + $0x120] ss:$16 sps:$4 sm:$0xff]   ;;  %v986_v32 = vld [vmem:[#allocation8 + $0x128] ss:$16 sps:$4 sm:$0xff]  }
  0x59   :  { %v987_v8 = vld [vmem:[#allocation8 + $0x144] ss:$16 sps:$4 sm:$0xff]   ;;  %v991_v33 = vld [vmem:[#allocation8 + $0x140] ss:$16 sps:$4 sm:$0xff]   ;;  %s1121_s12 = scalar_lea.vmem %s821_s11, 1280 }
  0x5a   :  { %606 = vmatpush1.bf16.msra.mxu0 %v949_v34  ;;  %667 = vmatpush1.bf16.msra.mxu1 %v950_v35  ;;  %v992_v34 = vld [vmem:[#allocation8 + $0x148] ss:$16 sps:$4 sm:$0xff]   ;;  %v993_v35 = vld [vmem:[#allocation8 + $0x164] ss:$16 sps:$4 sm:$0xff]   ;;  %p1122_p4 = scmp.ne.s32.totalorder %s821_s11, %s1121_s12  ;;  %p1127_p6 = scmp.lt.s32.totalorder %s1121_s12, %s1121_s12 }
  0x5b   :  { %607 = vmatprep.subr.bf16.mxu0 %v951_v36  ;;  %668 = vmatprep.subr.bf16.mxu1 %v953_v37  ;;  %v995_v36 = vld [vmem:[#allocation8 + $0x16c] ss:$16 sps:$4 sm:$0xff]   ;;  %v997_v37 = vld [vmem:[#allocation8 + $0x160] ss:$16 sps:$4 sm:$0xff]  }
  0x5c   :  { %p1128_p7 = por %p1127_p6, %p1126_p5 }
  0x5e   :  { %608 = vmatpush1.bf16.msra.mxu0 %v955_v38  ;;  %669 = vmatpush1.bf16.msra.mxu1 %v956_v39  ;;  %v998_v38 = vld [vmem:[#allocation8 + $0x168] ss:$16 sps:$4 sm:$0xff]   ;;  %v999_v39 = vld [vmem:[#allocation8 + $0x184] ss:$16 sps:$4 sm:$0xff]   ;;  %p1129_p8 = pnand %p1128_p7, %p1122_p4 }
  0x5f   :  { %609 = vmatprep.subr.bf16.mxu0 %v957_v40  ;;  %670 = vmatprep.subr.bf16.mxu1 %v959_v41  ;;  %v1001_v40 = vld [vmem:[#allocation8 + $0x18c] ss:$16 sps:$4 sm:$0xff]   ;;  %v1003_v41 = vld [vmem:[#allocation8 + $0x180] ss:$16 sps:$4 sm:$0xff]  }
  0x62   :  { %610 = vmatpush1.bf16.msra.mxu0 %v961_v42  ;;  %671 = vmatpush1.bf16.msra.mxu1 %v962_v43  ;;  %v1004_v42 = vld [vmem:[#allocation8 + $0x188] ss:$16 sps:$4 sm:$0xff]   ;;  %v1005_v43 = vld [vmem:[#allocation8 + $0x1a4] ss:$16 sps:$4 sm:$0xff]  }
  0x63   :  { %611 = vmatprep.subr.bf16.mxu0 %v963_v44  ;;  %672 = vmatprep.subr.bf16.mxu1 %v965_v45  ;;  %v1007_v44 = vld [vmem:[#allocation8 + $0x1ac] ss:$16 sps:$4 sm:$0xff]   ;;  %v1009_v45 = vld [vmem:[#allocation8 + $0x1a0] ss:$16 sps:$4 sm:$0xff]  }
  0x66   :  { %612 = vmatpush1.bf16.msra.mxu0 %v967_v46  ;;  %673 = vmatpush1.bf16.msra.mxu1 %v968_v47  ;;  %v1010_v46 = vld [vmem:[#allocation8 + $0x1a8] ss:$16 sps:$4 sm:$0xff]   ;;  %v1011_v47 = vld [vmem:[#allocation8 + $0x1c4] ss:$16 sps:$4 sm:$0xff]  }
  0x67   :  { %613 = vmatprep.subr.bf16.mxu0 %v969_v48  ;;  %674 = vmatprep.subr.bf16.mxu1 %v971_v49  ;;  %v1013_v48 = vld [vmem:[#allocation8 + $0x1cc] ss:$16 sps:$4 sm:$0xff]   ;;  %v1015_v49 = vld [vmem:[#allocation8 + $0x1c0] ss:$16 sps:$4 sm:$0xff]  }
  0x6a   :  { %614 = vmatpush1.bf16.msra.mxu0 %v973_v50  ;;  %675 = vmatpush1.bf16.msra.mxu1 %v974_v51  ;;  %v1016_v50 = vld [vmem:[#allocation8 + $0x1c8] ss:$16 sps:$4 sm:$0xff]   ;;  %v1017_v51 = vld [vmem:[#allocation8 + $0x1e4] ss:$16 sps:$4 sm:$0xff]  }
  0x6b   :  { %615 = vmatprep.subr.bf16.mxu0 %v975_v52  ;;  %676 = vmatprep.subr.bf16.mxu1 %v977_v53  ;;  %v1019_v52 = vld [vmem:[#allocation8 + $0x1ec] ss:$16 sps:$4 sm:$0xff]   ;;  %v1021_v53 = vld [vmem:[#allocation8 + $0x1e0] ss:$16 sps:$4 sm:$0xff]  }
  0x6e   :  { %616 = vmatpush1.bf16.msra.mxu0 %v979_v54  ;;  %677 = vmatpush1.bf16.msra.mxu1 %v980_v55  ;;  %v1022_v54 = vld [vmem:[#allocation8 + $0x1e8] ss:$16 sps:$4 sm:$0xff]  }
  0x6f   :  { %617 = vmatprep.subr.bf16.mxu0 %v981_v30 }
  0x72   :  { %618 = vmatpush1.bf16.msra.mxu0 %v985_v31 }
  0x73   :  { %619 = vmatprep.subr.bf16.mxu0 %v987_v8 }
  0x76   :  { %620 = vmatpush1.bf16.msra.mxu0 %v991_v33 }
  0x77   :  { %621 = vmatprep.subr.bf16.mxu0 %v993_v35 }
  0x7a   :  { %622 = vmatpush1.bf16.msra.mxu0 %v997_v37 }
  0x7b   :  { %623 = vmatprep.subr.bf16.mxu0 %v999_v39 }
  0x7e   :  { %624 = vmatpush1.bf16.msra.mxu0 %v1003_v41 }
  0x7f   :  { %625 = vmatprep.subr.bf16.mxu0 %v1005_v43 }
  0x82   :  { %626 = vmatpush1.bf16.msra.mxu0 %v1009_v45 }
  0x83   :  { %627 = vmatprep.subr.bf16.mxu0 %v1011_v47 }
  0x86   :  { %628 = vmatpush1.bf16.msra.mxu0 %v1015_v49 }
  0x87   :  { %629 = vmatprep.subr.bf16.mxu0 %v1017_v51 }
  0x8a   :  { %630 = vmatpush1.bf16.msra.mxu0 %v1021_v53 }
  0xdc   :  { %v86_v56 = vpop.xlane.xlu0 %85  ;;  %v92_v57 = vpop.xlane.xlu1 %91 }
  0xdd   :  { %v100_v58 = vmul.f32 0.00390625, %v86_v56  ;;  %v102_v59 = vmul.f32 0.00390625, %v92_v57  ;;  %v167_v57 = vlaneseq }
  0xdf   :  { %v1292_v60 = vsub.f32 %v74_v3, %v100_v58  ;;  %v1296_v61 = vsub.f32 %v75_v4, %v100_v58  ;;  %v1300_v62 = vsub.f32 %v78_v5, %v102_v59  ;;  %v1304_v63 = vsub.f32 %v79_v6, %v102_v59 }
  0xe0   :  { %v89_v13 = vpop.xlane.xlu0 %88  ;;  %v95_v14 = vpop.xlane.xlu1 %94 }
  0xe1   :  { %v101_v15 = vmul.f32 0.00390625, %v89_v13  ;;  %v103_v16 = vmul.f32 0.00390625, %v95_v14  ;;  %v115_v3 = vmul.f32 %v1292_v60, %v1292_v60  ;;  %v116_v0 = vmul.f32 %v1296_v61, %v1296_v61 }
  0xe2   :  { %v119_v4 = vmul.f32 %v1300_v62, %v1300_v62  ;;  %v120_v5 = vmul.f32 %v1304_v63, %v1304_v63 }
  0xe3   :  { %v1316_v1 = vsub.f32 %v76_v9, %v101_v15  ;;  %v1320_v6 = vsub.f32 %v77_v10, %v101_v15  ;;  %v1324_v19 = vsub.f32 %v80_v11, %v103_v16  ;;  %v1328_v20 = vsub.f32 %v81_v12, %v103_v16 }
  0xe4   :  { %v98_v21 = vpop.xlane.xlu0 %97  ;;  %v125_v22 = vadd.f32 %v116_v0, %v115_v3  ;;  %v131_v10 = vadd.f32 %v120_v5, %v119_v4  ;;  %v168_v3 = vshrl.u32 %v167_v57, 7 }
  0xe5   :  { %v104_v23 = vmul.f32 0.00390625, %v98_v21  ;;  %v117_v24 = vmul.f32 %v1316_v1, %v1316_v1  ;;  %v118_v9 = vmul.f32 %v1320_v6, %v1320_v6  ;;  %v121_v2 = vmul.f32 %v1324_v19, %v1324_v19 }
  0xe6   :  { %126 = vadd.xlane.f32.xlu1 %v125_v22  ;;  %v122_v11 = vmul.f32 %v1328_v20, %v1328_v20 }
  0xe7   :  { %v1340_v7 = vsub.f32 %v82_v17, %v104_v23  ;;  %v1344_v12 = vsub.f32 %v83_v18, %v104_v23  ;;  %v128_v25 = vadd.f32 %v118_v9, %v117_v24  ;;  %v983_v17 = vld [vmem:[#allocation8 + $0x12c] ss:$16 sps:$4 sm:$0xff]   ;;  %v169_v24 = vsub.s32 0, %v168_v3 }
  0xe8   :  { %v134_v26 = vadd.f32 %v122_v11, %v121_v2  ;;  %678 = vmatprep.subr.bf16.mxu1 %v983_v17  ;;  %v989_v18 = vld [vmem:[#allocation8 + $0x14c] ss:$16 sps:$4 sm:$0xff]   ;;  %v173_v9 = vsub.s32 1, %v168_v3 }
  0xe9   :  { %129 = vadd.xlane.f32.xlu0 %v128_v25  ;;  %v123_v27 = vmul.f32 %v1340_v7, %v1340_v7  ;;  %v124_v28 = vmul.f32 %v1344_v12, %v1344_v12  ;;  %679 = vmatpush1.bf16.msra.mxu1 %v986_v32 }
  0xea   :  { %132 = vadd.xlane.f32.xlu1 %v131_v10  ;;  %680 = vmatprep.subr.bf16.mxu1 %v989_v18  ;;  %v165_v10 = vld [vmem:[#allocation5] sm:$0x3] }
  0xeb   :  { %v137_v29 = vadd.f32 %v124_v28, %v123_v27  ;;  %v170_v11 = vrot.slane %v165_v10, %v169_v24  ;;  %v174_v25 = vrot.slane %v165_v10, %v173_v9  ;;  %v187_v27 = vld [vmem:[#allocation7] sm:$0x3] }
  0xec   :  { %v192_v31 = vrot.slane %v187_v27, %v169_v24  ;;  %v196_v32 = vrot.slane %v187_v27, %v173_v9 }
  0xed   :  { %135 = vadd.xlane.f32.xlu0 %v134_v26  ;;  %681 = vmatpush1.bf16.msra.mxu1 %v992_v34 }
  0xee   :  { %138 = vadd.xlane.f32.xlu1 %v137_v29  ;;  %682 = vmatprep.subr.bf16.mxu1 %v995_v36 }
  0xf1   :  { %683 = vmatpush1.bf16.msra.mxu1 %v998_v38 }
  0xf2   :  { %684 = vmatprep.subr.bf16.mxu1 %v1001_v40 }
  0xf5   :  { %685 = vmatpush1.bf16.msra.mxu1 %v1004_v42 }
  0xf6   :  { %686 = vmatprep.subr.bf16.mxu1 %v1007_v44 }
  0xf9   :  { %687 = vmatpush1.bf16.msra.mxu1 %v1010_v46 }
  0xfa   :  { %688 = vmatprep.subr.bf16.mxu1 %v1013_v48 }
  0xfd   :  { %689 = vmatpush1.bf16.msra.mxu1 %v1016_v50 }
  0xfe   :  { %690 = vmatprep.subr.bf16.mxu1 %v1019_v52 }
 0x101   :  { %691 = vmatpush1.bf16.msra.mxu1 %v1022_v54 }
 0x173   :  { %v127_v55 = vpop.xlane.xlu1 %126 }
 0x174   :  { %v140_v56 = vmul.f32 0.00390625, %v127_v55 }
 0x176   :  { %v145_v58 = vadd.f32 1e-05, %v140_v56  ;;  %v130_v59 = vpop.xlane.xlu0 %129 }
 0x177   :  { %v133_v13 = vpop.xlane.xlu1 %132  ;;  %v141_v14 = vmul.f32 0.00390625, %v130_v59 }
 0x178   :  { %1023 = vrsqrt.f32 %v145_v58  ;;  %v142_v15 = vmul.f32 0.00390625, %v133_v13 }
 0x179   :  { %v146_v16 = vadd.f32 1e-05, %v141_v14 }
 0x17a   :  { %v147_v0 = vadd.f32 1e-05, %v142_v15  ;;  %v136_v4 = vpop.xlane.xlu0 %135 }
 0x17b   :  { %1025 = vrsqrt.f32 %v146_v16  ;;  %v139_v5 = vpop.xlane.xlu1 %138  ;;  %v143_v21 = vmul.f32 0.00390625, %v136_v4 }
 0x17c   :  { %1027 = vrsqrt.f32 %v147_v0  ;;  %v144_v22 = vmul.f32 0.00390625, %v139_v5 }
 0x17d   :  { %v148_v23 = vadd.f32 1e-05, %v143_v21 }
 0x17e   :  { %v149_v2 = vadd.f32 1e-05, %v144_v22 }
 0x17f   :  { %1029 = vrsqrt.f32 %v148_v23 }
 0x180   :  { %1031 = vrsqrt.f32 %v149_v2 }
 0x182   :  { %v1024_v26 = vpop.eup %1023 }
 0x183   :  { %v156_v28 = vmul.f32 %v1024_v26, %v1296_v61  ;;  %v155_v29 = vmul.f32 %v1024_v26, %v1292_v60 }
 0x185   :  { %v1026_v30 = vpop.eup %1025  ;;  %v178_v17 = vmul.f32 %v174_v25, %v156_v28  ;;  %v177_v8 = vmul.f32 %v170_v11, %v155_v29 }
 0x186   :  { %v1028_v18 = vpop.eup %1027  ;;  %v158_v33 = vmul.f32 %v1026_v30, %v1320_v6  ;;  %v157_v34 = vmul.f32 %v1026_v30, %v1316_v1 }
 0x187   :  { %v160_v35 = vmul.f32 %v1028_v18, %v1304_v63  ;;  %v200_v39 = vadd.f32 %v196_v32, %v178_v17  ;;  %v199_v40 = vadd.f32 %v192_v31, %v177_v8  ;;  %v159_v45 = vmul.f32 %v1028_v18, %v1300_v62 }
 0x188   :  { %v180_v36 = vmul.f32 %v174_v25, %v158_v33  ;;  %v179_v37 = vmul.f32 %v170_v11, %v157_v34 }
 0x189   :  { %v1030_v38 = vpop.eup %1029  ;;  %v182_v61 = vmul.f32 %v174_v25, %v160_v35  ;;  %v181_v51 = vmul.f32 %v170_v11, %v159_v45 }
 0x18a   :  { %v1032_v41 = vpop.eup %1031  ;;  %v202_v60 = vadd.f32 %v196_v32, %v180_v36  ;;  %v201_v42 = vadd.f32 %v192_v31, %v179_v37  ;;  %v162_v43 = vmul.f32 %v1030_v38, %v1328_v20  ;;  %v161_v44 = vmul.f32 %v1030_v38, %v1324_v19 }
 0x18b   :  { %v164_v6 = vmul.f32 %v1032_v41, %v1344_v12  ;;  %v204_v48 = vadd.f32 %v196_v32, %v182_v61  ;;  %v163_v19 = vmul.f32 %v1032_v41, %v1340_v7  ;;  %v203_v12 = vadd.f32 %v192_v31, %v181_v51 }
 0x18c   :  { %v210_v1 = vpack.c.bf16 %v202_v60, %v200_v39  ;;  %v209_v46 = vpack.c.bf16 %v201_v42, %v199_v40  ;;  %v184_v63 = vmul.f32 %v174_v25, %v162_v43  ;;  %v183_v47 = vmul.f32 %v170_v11, %v161_v44 }
 0x18d   :  { %v186_v50 = vmul.f32 %v174_v25, %v164_v6  ;;  %v185_v54 = vmul.f32 %v170_v11, %v163_v19 }
 0x18e   :  { %631 = vmatprep.mubr.bf16.mxu0 %v210_v1  ;;  %692 = vmatprep.mubr.bf16.mxu1 %v210_v1  ;;  %v206_v49 = vadd.f32 %v196_v32, %v184_v63  ;;  %v205_v20 = vadd.f32 %v192_v31, %v183_v47 }
 0x18f   :  { %632 = vmatmul.mubr.bf16.vlgmr.msra.gmra.mrb[0].mxu0 %v209_v46  ;;  %693 = vmatmul.mubr.bf16.vlgmr.msra.gmra.mrb[0].mxu1 %v209_v46  ;;  %v208_v62 = vadd.f32 %v196_v32, %v186_v50  ;;  %v207_v56 = vadd.f32 %v192_v31, %v185_v54 }
 0x190   :  { %v212_v52 = vpack.c.bf16 %v206_v49, %v204_v48  ;;  %v211_v53 = vpack.c.bf16 %v205_v20, %v203_v12 }
 0x191   :  { %v214_v55 = vpack.c.bf16 %v208_v62, %v208_v62  ;;  %v213_v57 = vpack.c.bf16 %v207_v56, %v207_v56 }
 0x192   :  { %641 = vmatprep.mubr.bf16.mxu0 %v212_v52  ;;  %702 = vmatprep.mubr.bf16.mxu1 %v212_v52 }
 0x197   :  { %642 = vmatmul.mubr.bf16.gmra.mrb[4].mxu0 %v211_v53  ;;  %703 = vmatmul.mubr.bf16.gmra.mrb[4].mxu1 %v211_v53 }
 0x198   :  { %651 = vmatprep.mubr.bf16.mxu0 %v214_v55  ;;  %712 = vmatprep.mubr.bf16.mxu1 %v214_v55 }
 0x19f   :  { %652 = vmatmul.mubr.bf16.gmra.mrb[8].mxu0 %v213_v57  ;;  %713 = vmatmul.mubr.bf16.gmra.mrb[8].mxu1 %v213_v57 }
 0x262   :  { %v633_v58 = vpop.f32.mrb[0].mxu0  ;;  %v694_v59 = vpop.f32.mrb[0].mxu1 }
 0x263   :  { %v721_v13 = vmax.f32 %v633_v58, 0.0  ;;  %v723_v14 = vmax.f32 %v694_v59, 0.0  ;;  %v635_v7 = vpop.f32.mrb[1].mxu0  ;;  %v696_v15 = vpop.f32.mrb[1].mxu1 }
 0x264   :  { %v722_v16 = vmax.f32 %v635_v7, 0.0  ;;  %v724_v3 = vmax.f32 %v696_v15, 0.0  ;;  %v637_v0 = vpop.f32.mrb[2].mxu0  ;;  %v698_v4 = vpop.f32.mrb[2].mxu1 }
 0x265   :  { %v725_v5 = vmax.f32 %v637_v0, 0.0  ;;  %v727_v21 = vmax.f32 %v698_v4, 0.0  ;;  %v639_v22 = vpop.f32.mrb[3].mxu0  ;;  %v700_v23 = vpop.f32.mrb[3].mxu1 }
 0x266   :  { %v908_v24 = vpack.c.bf16 %v722_v16, %v721_v13  ;;  %v909_v9 = vpack.c.bf16 %v724_v3, %v723_v14  ;;  %v726_v2 = vmax.f32 %v639_v22, 0.0  ;;  %v728_v10 = vmax.f32 %v700_v23, 0.0 }
 0x268   :  { %805 = vst [vmem:[#allocation10] sm:$0xff] %v908_v24  ;;  %806 = vst [vmem:[#allocation10 + $0x8] sm:$0xff] %v909_v9  ;;  %v910_v11 = vpack.c.bf16 %v726_v2, %v725_v5  ;;  %v911_v25 = vpack.c.bf16 %v728_v10, %v727_v21 }
 0x26a   :  { %807 = vst [vmem:[#allocation10 + $0x10] sm:$0xff] %v910_v11  ;;  %808 = vst [vmem:[#allocation10 + $0x18] sm:$0xff] %v911_v25  ;;  %v643_v26 = vpop.f32.mrb[4].mxu0  ;;  %v704_v27 = vpop.f32.mrb[4].mxu1 }
 0x26b   :  { %v729_v28 = vmax.f32 %v643_v26, 0.0  ;;  %v731_v29 = vmax.f32 %v704_v27, 0.0  ;;  %v645_v30 = vpop.f32.mrb[5].mxu0  ;;  %v706_v17 = vpop.f32.mrb[5].mxu1 }
 0x26c   :  { %v730_v31 = vmax.f32 %v645_v30, 0.0  ;;  %v732_v32 = vmax.f32 %v706_v17, 0.0  ;;  %v647_v8 = vpop.f32.mrb[6].mxu0  ;;  %v708_v18 = vpop.f32.mrb[6].mxu1 }
 0x26d   :  { %v733_v33 = vmax.f32 %v647_v8, 0.0  ;;  %v735_v34 = vmax.f32 %v708_v18, 0.0  ;;  %v649_v35 = vpop.f32.mrb[7].mxu0  ;;  %v710_v36 = vpop.f32.mrb[7].mxu1 }
 0x26e   :  { %v912_v37 = vpack.c.bf16 %v730_v31, %v729_v28  ;;  %v913_v38 = vpack.c.bf16 %v732_v32, %v731_v29  ;;  %v734_v39 = vmax.f32 %v649_v35, 0.0  ;;  %v736_v40 = vmax.f32 %v710_v36, 0.0 }
 0x270   :  { %809 = vst [vmem:[#allocation10 + $0x20] sm:$0xff] %v912_v37  ;;  %810 = vst [vmem:[#allocation10 + $0x28] sm:$0xff] %v913_v38  ;;  %v914_v61 = vpack.c.bf16 %v734_v39, %v733_v33  ;;  %v915_v41 = vpack.c.bf16 %v736_v40, %v735_v34 }
 0x272   :  { %811 = vst [vmem:[#allocation10 + $0x30] sm:$0xff] %v914_v61  ;;  %812 = vst [vmem:[#allocation10 + $0x38] sm:$0xff] %v915_v41  ;;  %v653_v60 = vpop.f32.mrb[8].mxu0  ;;  %v714_v42 = vpop.f32.mrb[8].mxu1 }
 0x273   :  { %v737_v43 = vmax.f32 %v653_v60, 0.0  ;;  %v739_v44 = vmax.f32 %v714_v42, 0.0  ;;  %v655_v45 = vpop.f32.mrb[9].mxu0  ;;  %v716_v6 = vpop.f32.mrb[9].mxu1 }
 0x274   :  { %v738_v1 = vmax.f32 %v655_v45, 0.0  ;;  %v740_v46 = vmax.f32 %v716_v6, 0.0  ;;  %v657_v63 = vpop.f32.mrb[10].mxu0  ;;  %v718_v47 = vpop.f32.mrb[10].mxu1 }
 0x275   :  { %v658_v48 = vpop.f32.mrb[11].mxu0  ;;  %v719_v49 = vpop.f32.mrb[11].mxu1 }
 0x276   :  { %v916_v50 = vpack.c.bf16 %v738_v1, %v737_v43  ;;  %v917_v51 = vpack.c.bf16 %v740_v46, %v739_v44 }
 0x278   :  { %813 = vst [vmem:[#allocation10 + $0x40] sm:$0xff] %v916_v50  ;;  %814 = vst [vmem:[#allocation10 + $0x48] sm:$0xff] %v917_v51 }
 0x279   :  { %1132 = shalt.err (!%p1129_p8)
}
 0x27a   :  { %s1133_s15 = scalar_lea.hbm %s1379_s4, 1280 }
 0x27b   :  { %p1134_p9 = scmp.ne.s32.totalorder %s1379_s4, %s1133_s15  ;;  %p1137_p10 = scmp.lt.u32.totalorder %s1133_s15, %s1379_s4 }
 0x27d   :  { %p1139_p11 = pnand %p1137_p10, %p1134_p9 }
 0x27f   :  { %1142 = shalt.err (!%p1139_p11)
}
 0x280   :  { %826 = dma.vmem_to_hbm [thread:$0]  %s821_s11, 1280, %s1379_s4, [#allocation4], %s1157_s2, %s1157_s2, %s1158_s9  }
 0x281   :  { %1149 = dma.done.wait [#allocation4], 1280  }
 0x282   :  { %1150 = vsyncadd [#allocation4], 4294966016 }
 0x283   :  { %830 = vsyncpa [#allocation3], 1 }
 0x284   :  { %831 = vsyncpa [#allocation6], 1 }
 0x285   :  { %832 = vsyncpa [#allocation9], 1 }
 0x286   :  { %833 = vsyncpa [#allocation4], 1 }

</bundles_post_ra>
